<compile_context>
chip_gen: v7x
topology: tpu7x:2x2x1
jax: 0.10.0
libtpu: 0.0.40
codegen_flags: <defaults>
</compile_context>

<pallas_src>
import jax
import jax.numpy as jnp
from jax import lax
from jax.experimental import pallas as pl
from jax.experimental.pallas import tpu as pltpu


def _conv_kernel(x_ref, w_ref, b_ref, o_ref):
    # x_ref: (1, K*K*Cin, Ppad)  im2col columns for one batch element
    # w_ref: (Cout, K*K*Cin)     flattened filter (tap-major, cin-minor)
    # b_ref: (Cout, 1)           bias
    # o_ref: (1, Cout, Ppad)     output tile, already in NCHW-flat layout
    o_ref[0] = (
        jnp.dot(w_ref[...], x_ref[0], preferred_element_type=jnp.float32)
        + b_ref[...]  # (Cout, 1) broadcasts over Ppad
    )


def _conv2d_3x3_pallas(x_nchw, weight, bias):
    """x_nchw: (N, Cin, H, W); weight: (Cout, Cin, K, K); bias: (Cout,)."""
    n, cin, h, w = x_nchw.shape
    cout, _, kh, kw = weight.shape
    hout, wout = h - kh + 1, w - kw + 1
    p = hout * wout
    p_pad = ((p + 127) // 128) * 128  # lane-align flattened spatial dim
    kkc = kh * kw * cin

    # --- glue (fused under jit): im2col directly from NCHW, tap-major layout ---
    taps = []
    for i in range(kh):
        for j in range(kw):
            taps.append(
                x_nchw[:, :, i : i + hout, j : j + wout].reshape(n, cin, p)
            )
    x_cols = jnp.concatenate(taps, axis=1)  # (N, K*K*Cin, P), index = t*Cin + c
    if p_pad != p:
        x_cols = jnp.pad(x_cols, ((0, 0), (0, 0), (0, p_pad - p)))

    # (Cout, Cin, KH, KW) -> (Cout, KH, KW, Cin) -> (Cout, K*K*Cin)
    # matches x_cols' tap-major / cin-minor ordering on the contraction axis
    w_mat = jnp.transpose(weight, (0, 2, 3, 1)).reshape(cout, kkc)
    b_mat = bias.reshape(cout, 1)

    # --- hot path: one fused matmul per batch element ---
    out_pad = pl.pallas_call(
        _conv_kernel,
        out_shape=jax.ShapeDtypeStruct((n, cout, p_pad), jnp.float32),
        grid_spec=pltpu.PrefetchScalarGridSpec(
            num_scalar_prefetch=0,
            grid=(n,),
            in_specs=[
                pl.BlockSpec((1, kkc, p_pad), lambda b: (b, 0, 0)),
                pl.BlockSpec((cout, kkc), lambda b: (0, 0)),
                pl.BlockSpec((cout, 1), lambda b: (0, 0)),
            ],
            out_specs=pl.BlockSpec((1, cout, p_pad), lambda b: (b, 0, 0)),
        ),
        compiler_params=pltpu.CompilerParams(
            dimension_semantics=("parallel",)
        ),
    )(x_cols, w_mat, b_mat)

    # --- glue: crop the lane pad; already (N, Cout, P) so no transpose needed ---
    return out_pad[:, :, :p].reshape(n, cout, hout, wout)


conv2d_3x3_pallas = jax.jit(_conv2d_3x3_pallas)


if __name__ == "__main__":
    key = jax.random.PRNGKey(0)
    k_x, k_w, k_b = jax.random.split(key, 3)

    N, CIN, H, W = 2, 3, 16, 16
    COUT, K = 64, 3

    x = jax.random.normal(k_x, (N, CIN, H, W), dtype=jnp.float32)
    # deterministic synthetic parameters (PyTorch-like scale)
    fan_in = CIN * K * K
    bound = 1.0 / (fan_in ** 0.5)
    weight = jax.random.uniform(
        k_w, (COUT, CIN, K, K), minval=-bound, maxval=bound, dtype=jnp.float32
    )
    bias = jax.random.uniform(
        k_b, (COUT,), minval=-bound, maxval=bound, dtype=jnp.float32
    )

    out = conv2d_3x3_pallas(x, weight, bias)
    out = jax.block_until_ready(out)

    # sanity check against XLA's conv (validation only, not the kernel path)
    ref = lax.conv_general_dilated(
        x, weight, window_strides=(1, 1), padding="VALID",
        dimension_numbers=("NCHW", "OIHW", "NCHW"),
    ) + bias.reshape(1, COUT, 1, 1)
    assert out.shape == (N, COUT, H - K + 1, W - K + 1)
    assert jnp.allclose(out, ref, atol=1e-4, rtol=1e-4)

    print("KERNEL_OK")
</pallas_src>

<mosaic_0001>
module attributes {stable_mosaic.version = 11 : i64} {
  func.func @_conv_kernel(%arg0: i32, %arg1: memref<1x27x256xf32, #tpu.memory_space<vmem>>, %arg2: memref<64x27xf32, #tpu.memory_space<vmem>>, %arg3: memref<64x1xf32, #tpu.memory_space<vmem>>, %arg4: memref<1x64x256xf32, #tpu.memory_space<vmem>>) attributes {dimension_semantics = [#tpu.dimension_semantics<parallel>], iteration_bounds = array<i64: 2>, scalar_prefetch = 0 : i64, scratch_operands = 0 : i64, tpu.core_type = #tpu.core_type<tc>, window_params = [{transform_indices = @transform_0, window_bounds = array<i64: 1, 27, 256>}, {pipeline_mode = #tpu.pipeline_mode<synchronous>, transform_indices = @transform_1, window_bounds = array<i64: 64, 27>}, {pipeline_mode = #tpu.pipeline_mode<synchronous>, transform_indices = @transform_2, window_bounds = array<i64: 64, 1>}, {transform_indices = @transform_3, window_bounds = array<i64: 1, 64, 256>}]} {
    %c0 = arith.constant 0 : index
    %c0_0 = arith.constant 0 : index
    %0 = vector.load %arg2[%c0, %c0_0] : memref<64x27xf32, #tpu.memory_space<vmem>>, vector<64x27xf32>
    %c0_1 = arith.constant 0 : index
    %c0_2 = arith.constant 0 : index
    %c0_3 = arith.constant 0 : index
    %1 = vector.load %arg1[%c0_1, %c0_2, %c0_3] : memref<1x27x256xf32, #tpu.memory_space<vmem>>, vector<1x27x256xf32>
    %2 = vector.shape_cast %1 : vector<1x27x256xf32> to vector<27x256xf32>
    %cst = arith.constant dense<0.000000e+00> : vector<64x256xf32>
    %3 = tpu.matmul %0, %2, %cst {dimension_numbers = #tpu.dot_dimension_numbers<[1], [0], [0], [1], [0, 0, 1, 1], [], []>} : vector<64x27xf32>, vector<27x256xf32>, vector<64x256xf32> -> vector<64x256xf32>
    %c0_4 = arith.constant 0 : index
    %c0_5 = arith.constant 0 : index
    %4 = vector.load %arg3[%c0_4, %c0_5] : memref<64x1xf32, #tpu.memory_space<vmem>>, vector<64x1xf32>
    %5 = vector.broadcast %4 : vector<64x1xf32> to vector<64x256xf32>
    %6 = arith.addf %3, %5 : vector<64x256xf32>
    %c0_6 = arith.constant 0 : index
    %c0_7 = arith.constant 0 : index
    %c0_8 = arith.constant 0 : index
    %7 = vector.load %arg4[%c0_6, %c0_7, %c0_8] : memref<1x64x256xf32, #tpu.memory_space<vmem>>, vector<1x64x256xf32>
    %8 = vector.shape_cast %7 : vector<1x64x256xf32> to vector<64x256xf32>
    %9 = vector.shape_cast %6 : vector<64x256xf32> to vector<1x64x256xf32>
    tpu.vector_store %arg4[%c0_6, %c0_7, %c0_8], %9 {strides = array<i32>} : memref<1x64x256xf32, #tpu.memory_space<vmem>>, vector<1x64x256xf32>,
    return
  }
  func.func @transform_0(%arg0: i32) -> (i32, i32, i32) {
    %c0_i32 = arith.constant 0 : i32
    %c0_i32_0 = arith.constant 0 : i32
    %c0_i32_1 = arith.constant 0 : i32
    return %arg0, %c0_i32, %c0_i32_0 : i32, i32, i32
  }
  func.func @transform_1(%arg0: i32) -> (i32, i32) {
    %c0_i32 = arith.constant 0 : i32
    %c0_i32_0 = arith.constant 0 : i32
    %c0_i32_1 = arith.constant 0 : i32
    return %c0_i32, %c0_i32_0 : i32, i32
  }
  func.func @transform_2(%arg0: i32) -> (i32, i32) {
    %c0_i32 = arith.constant 0 : i32
    %c0_i32_0 = arith.constant 0 : i32
    %c0_i32_1 = arith.constant 0 : i32
    return %c0_i32, %c0_i32_0 : i32, i32
  }
  func.func @transform_3(%arg0: i32) -> (i32, i32, i32) {
    %c0_i32 = arith.constant 0 : i32
    %c0_i32_0 = arith.constant 0 : i32
    %c0_i32_1 = arith.constant 0 : i32
    return %arg0, %c0_i32, %c0_i32_0 : i32, i32, i32
  }
}

</mosaic_0001>

<bundles_post_ra>
// kernel: _conv2d_3x3_pallas.1
= control target key start
LH: loop header
LB: loop body
LE: loop exit
PB: predicated region body
PF: predicated region fallthrough
CT: control target
= control target key end

     0   :  { %s532_s12 = smov 0   ;;  %s647_s0 = inlined_call_operand.vmem [shape: f32[2,27,256], index: 0, kind: input, shape index: {}]   ;;  %s648_s1 = inlined_call_operand.vmem [shape: f32[64,27], index: 1, kind: input, shape index: {}]   ;;  %s649_s2 = inlined_call_operand.vmem [shape: f32[64,1], index: 2, kind: input, shape index: {}]   ;;  %s650_s3 = inlined_call_operand.vmem [shape: f32[2,64,256], index: 3, kind: output, shape index: {}]  }
   0x1 LB: > { %s451_s13 = sadd.s32 4294967295, %s507_s12   ;;  %p455_p0 = scmp.ge.s32.totalorder %s507_s12, 1  ;;  %s507_s12 = sphi %s532_s12, %s13_s12  }
   0x2   : > { %p137_p1 = scmp.lt.s32.totalorder %s507_s12, 3 }
   0x4   : > { %p138_p2 = pnand %p455_p0, %p137_p1 }
   0x5   : > { %p161_p3 = scmp.lt.s32.totalorder (!%p138_p2), %s451_s13, 1  ;;  %v509_v0 = vmov (!%p138_p2), 0.0   ;;  %v510_v1 = vmov (!%p138_p2), 0   ;;  %v189_v2 = vld [vmem:[%s649_s2 + $0x10] sm:$0xff] (!%p138_p2)  ;;  %v187_v3 = vld [vmem:[%s649_s2] sm:$0xff] (!%p138_p2)  ;;  %vm260_vm0 = vcmask (!%p138_p2), 1042432  }
   0x6   : > { %141 = sbr.rel (%p138_p2) target bundleno = 255 (0xff), region = 32  ;;  %331 = vmatprep.mubr.f32.mxu0 (!%p138_p2), %v509_v0  ;;  %355 = vmatprep.mubr.f32.mxu1 (!%p138_p2), %v509_v0  ;;  %v190_v4 = vld [vmem:[%s649_s2 + $0x18] sm:$0xff] (!%p138_p2)  ;;  %vm511_vm1 = vmmov (!%p138_p2), 1   ;;  %v188_v17 = vld [vmem:[%s649_s2 + $0x8] sm:$0xff] (!%p138_p2)  ;;  %v191_v20 = vld [vmem:[%s649_s2 + $0x20] sm:$0xff] (!%p138_p2)  ;;  %vm235_vm3 = vcmask (!%p138_p2), 220160  }
   0x7   : > { %500 = vset.pattern.permute.xlu1 (!%p138_p2), %v510_v1  ;;  %499 = vset.pattern.permute.xlu0 (!%p138_p2), %v510_v1  ;;  %vm557_vm2 = vmpackc.low (!%p138_p2), %vm260_vm0, %vm511_vm1  ;;  %v192_v18 = vld [vmem:[%s649_s2 + $0x28] sm:$0xff] (!%p138_p2)  ;;  %v194_v21 = vld [vmem:[%s649_s2 + $0x38] sm:$0xff] (!%p138_p2) }
   0x8   : > { %207 = vperm.xlu1 (!%p138_p2), %500, %v189_v2   ;;  %197 = vperm.xlu0 (!%p138_p2), %499, %v187_v3   ;;  %v171_v22 = vld [vmem:[%s648_s1] sm:$0xff] (!%p138_p2)  ;;  %v193_v24 = vld [vmem:[%s649_s2 + $0x30] sm:$0xff] (!%p138_p2)  ;;  %v172_v25 = vld [vmem:[%s648_s1 + $0x8] sm:$0xff] (!%p138_p2) }
   0x9   : > { %v175_v23 = vld [vmem:[%s648_s1 + $0x20] sm:$0xff] (!%p138_p2)  ;;  %v176_v26 = vld [vmem:[%s648_s1 + $0x28] sm:$0xff] (!%p138_p2)  ;;  %v173_v27 = vld [vmem:[%s648_s1 + $0x10] sm:$0xff] (!%p138_p2) }
   0xa   : > { %v177_v28 = vld [vmem:[%s648_s1 + $0x30] sm:$0xff] (!%p138_p2)  ;;  %v174_v29 = vld [vmem:[%s648_s1 + $0x18] sm:$0xff] (!%p138_p2) }
   0xb   : > { %v178_v30 = vld [vmem:[%s648_s1 + $0x38] sm:$0xff] (!%p138_p2) }
   0xc   : > { %212 = vperm.xlu1 (!%p138_p2), %500, %v190_v4   ;;  %202 = vperm.xlu0 (!%p138_p2), %499, %v188_v17  }
   0xd   : > { %s654_s13 = smov (!%p161_p3, %s451_s13), 1 }
   0xe   : > { %s472_s16 = sshll.u32 %s654_s13, 6  ;;  %s473_s25 = sshll.u32 %s654_s13, 7 }
   0xf   : > { %s165_s21 = scalar_lea.vmem %s647_s0, %s472_s16  ;;  %s626_s28 = scalar_lea.vmem %s650_s3, %s473_s25 }
  0x10   : > { %v180_v5 = vld [vmem:[%s165_s21 + $0x8] sm:$0xff]  ;;  %v182_v6 = vld [vmem:[%s165_s21 + $0x18] sm:$0xff]  ;;  %v179_v7 = vld [vmem:[%s165_s21] sm:$0xff]  ;;  %222 = vperm.xlu1 %500, %v192_v18   ;;  %217 = vperm.xlu0 %499, %v191_v20  }
  0x11   : > { %v474_v8 = vpack.c.bf16 %v182_v6, %v180_v5  ;;  %v181_v9 = vld [vmem:[%s165_s21 + $0x10] sm:$0xff]  ;;  %v184_v10 = vld [vmem:[%s165_s21 + $0x28] sm:$0xff]  ;;  %v186_v11 = vld [vmem:[%s165_s21 + $0x38] sm:$0x7] }
  0x12   : > { %v476_v12 = vpack.c.bf16 %v181_v9, %v179_v7  ;;  %v478_v13 = vpack.c.bf16 %v186_v11, %v184_v10  ;;  %v183_v15 = vld [vmem:[%s165_s21 + $0x20] sm:$0xff]  ;;  %v185_v16 = vld [vmem:[%s165_s21 + $0x30] sm:$0x7] }
  0x13   : > { %475 = vmatprep.subr.bf16.mxu0 %v474_v8  ;;  %484 = vmatprep.subr.bf16.mxu1 %v474_v8  ;;  %v481_v19 = vpack.c.bf16 %v185_v16, %v183_v15 }
  0x14   : > { %477 = vmatpush1.bf16.msra.mxu0 %v476_v12  ;;  %486 = vmatpush1.bf16.msra.mxu1 %v476_v12 }
  0x15   : > { %480 = vmatprep.subr.msk.bf16.mxu0 %vm557_vm2, %v478_v13  ;;  %485 = vmatprep.subr.msk.bf16.mxu1 %vm557_vm2, %v478_v13 }
  0x16   : > { %232 = vperm.xlu1 %500, %v194_v21   ;;  %227 = vperm.xlu0 %499, %v193_v24  }
  0x18   : > { %483 = vmatpush1.bf16.msk.msra.mxu0 %vm557_vm2, %v481_v19  ;;  %487 = vmatpush1.bf16.msk.msra.mxu1 %vm557_vm2, %v481_v19 }
  0x1b   : > { %462 = vmatmul.mubr.msk.f32.vlgmr.msra.gmra.mrb[0].mxu0 %vm235_vm3, %v171_v22  ;;  %466 = vmatmul.mubr.msk.f32.vlgmr.msra.gmra.mrb[0].mxu1 %vm235_vm3, %v175_v23 }
  0x1c   : > { %337 = vmatprep.mubr.f32.mxu0 %v509_v0  ;;  %361 = vmatprep.mubr.f32.mxu1 %v509_v0 }
  0x1f   : > { %463 = vmatmul.mubr.msk.f32.gmra.mrb[2].mxu0 %vm235_vm3, %v172_v25  ;;  %467 = vmatmul.mubr.msk.f32.gmra.mrb[2].mxu1 %vm235_vm3, %v176_v26 }
  0x20   : > { %343 = vmatprep.mubr.f32.mxu0 %v509_v0  ;;  %367 = vmatprep.mubr.f32.mxu1 %v509_v0 }
  0x23   : > { %464 = vmatmul.mubr.msk.f32.gmra.mrb[4].mxu0 %vm235_vm3, %v173_v27  ;;  %468 = vmatmul.mubr.msk.f32.gmra.mrb[4].mxu1 %vm235_vm3, %v177_v28 }
  0x24   : > { %349 = vmatprep.mubr.f32.mxu0 %v509_v0  ;;  %373 = vmatprep.mubr.f32.mxu1 %v509_v0 }
  0x27   : > { %465 = vmatmul.mubr.msk.f32.gmra.mrb[6].mxu0 %vm235_vm3, %v174_v29  ;;  %469 = vmatmul.mubr.msk.f32.gmra.mrb[6].mxu1 %vm235_vm3, %v178_v30 }
  0x87   : > { %v198_v31 = vpop.permute.xlu0 %197  ;;  %v208_v32 = vpop.permute.xlu1 %207 }
  0x8b   : > { %v203_v33 = vpop.permute.xlu0 %202  ;;  %v213_v34 = vpop.permute.xlu1 %212 }
  0x8f   : > { %v218_v35 = vpop.permute.xlu0 %217  ;;  %v223_v44 = vpop.permute.xlu1 %222 }
  0x95   : > { %v228_v53 = vpop.permute.xlu0 %227  ;;  %v233_v62 = vpop.permute.xlu1 %232 }
  0xee   : > { %v333_v36 = vpop.f32.mrb[0].mxu0  ;;  %v357_v37 = vpop.f32.mrb[0].mxu1 }
  0xef   : > { %v334_v38 = vadd.f32 %v333_v36, %v198_v31  ;;  %v358_v39 = vadd.f32 %v357_v37, %v218_v35  ;;  %v335_v40 = vpop.f32.mrb[1].mxu0  ;;  %v359_v41 = vpop.f32.mrb[1].mxu1 }
  0xf0   : > { %v336_v42 = vadd.f32 %v335_v40, %v198_v31  ;;  %v360_v43 = vadd.f32 %v359_v41, %v218_v35 }
  0xf1   : > { %380 = vst [vmem:[%s626_s28] sm:$0xff] %v334_v38  ;;  %388 = vst [vmem:[%s626_s28 + $0x40] sm:$0xff] %v358_v39 }
  0xf2   : > { %381 = vst [vmem:[%s626_s28 + $0x8] sm:$0xff] %v336_v42  ;;  %389 = vst [vmem:[%s626_s28 + $0x48] sm:$0xff] %v360_v43  ;;  %v339_v45 = vpop.f32.mrb[2].mxu0  ;;  %v363_v46 = vpop.f32.mrb[2].mxu1 }
  0xf3   : > { %v340_v47 = vadd.f32 %v339_v45, %v203_v33  ;;  %v364_v48 = vadd.f32 %v363_v46, %v223_v44  ;;  %v341_v49 = vpop.f32.mrb[3].mxu0  ;;  %v365_v50 = vpop.f32.mrb[3].mxu1 }
  0xf4   : > { %v342_v51 = vadd.f32 %v341_v49, %v203_v33  ;;  %v366_v52 = vadd.f32 %v365_v50, %v223_v44 }
  0xf5   : > { %382 = vst [vmem:[%s626_s28 + $0x10] sm:$0xff] %v340_v47  ;;  %390 = vst [vmem:[%s626_s28 + $0x50] sm:$0xff] %v364_v48 }
  0xf6   : > { %383 = vst [vmem:[%s626_s28 + $0x18] sm:$0xff] %v342_v51  ;;  %391 = vst [vmem:[%s626_s28 + $0x58] sm:$0xff] %v366_v52  ;;  %v345_v54 = vpop.f32.mrb[4].mxu0  ;;  %v369_v55 = vpop.f32.mrb[4].mxu1 }
  0xf7   : > { %v346_v56 = vadd.f32 %v345_v54, %v208_v32  ;;  %v370_v57 = vadd.f32 %v369_v55, %v228_v53  ;;  %v347_v58 = vpop.f32.mrb[5].mxu0  ;;  %v371_v59 = vpop.f32.mrb[5].mxu1 }
  0xf8   : > { %v348_v60 = vadd.f32 %v347_v58, %v208_v32  ;;  %v372_v61 = vadd.f32 %v371_v59, %v228_v53 }
  0xf9   : > { %384 = vst [vmem:[%s626_s28 + $0x20] sm:$0xff] %v346_v56  ;;  %392 = vst [vmem:[%s626_s28 + $0x60] sm:$0xff] %v370_v57 }
  0xfa   : > { %385 = vst [vmem:[%s626_s28 + $0x28] sm:$0xff] %v348_v60  ;;  %393 = vst [vmem:[%s626_s28 + $0x68] sm:$0xff] %v372_v61  ;;  %v351_v63 = vpop.f32.mrb[6].mxu0  ;;  %v375_v0 = vpop.f32.mrb[6].mxu1 }
  0xfb   : > { %v352_v1 = vadd.f32 %v351_v63, %v213_v34  ;;  %v376_v2 = vadd.f32 %v375_v0, %v233_v62  ;;  %v353_v3 = vpop.f32.mrb[7].mxu0  ;;  %v377_v4 = vpop.f32.mrb[7].mxu1 }
  0xfc   : > { %v354_v5 = vadd.f32 %v353_v3, %v213_v34  ;;  %v378_v6 = vadd.f32 %v377_v4, %v233_v62 }
  0xfd   : > { %386 = vst [vmem:[%s626_s28 + $0x30] sm:$0xff] %v352_v1  ;;  %394 = vst [vmem:[%s626_s28 + $0x70] sm:$0xff] %v376_v2 }
  0xfe   : > { %387 = vst [vmem:[%s626_s28 + $0x38] sm:$0xff] %v354_v5  ;;  %395 = vst [vmem:[%s626_s28 + $0x78] sm:$0xff] %v378_v6 }
  0xff PF: > { %s13_s12 = sadd.s32 1, %s507_s12  }
 0x100   : > { %p10_p4 = scmp.ge.s32.totalorder %s13_s12, 4  }
 0x102   :  { %12 = sbr.rel (!%p10_p4) target bundleno = 1 (0x1), region = 62 }

</bundles_post_ra>
